<compile_context>
chip_gen: v7x
topology: tpu7x:2x2x1
jax: 0.10.0
libtpu: 0.0.40
codegen_flags: <defaults>
</compile_context>

<pallas_src>
import functools

import jax
import jax.numpy as jnp
from jax import lax
from jax.experimental import pallas as pl
from jax.experimental.pallas import tpu as pltpu


def _round_up(x, m):
    return (x + m - 1) // m * m


def _vmem_capacity_bytes():
    try:
        return pltpu.get_tpu_info().vmem_capacity_bytes
    except Exception:
        return 64 * 2 ** 20  # v7x per-TensorCore VMEM (smallest current generation)


def _block_candidates(length, cap):
    """Tile sizes that evenly divide `length` (largest first), capped at `cap`."""
    cands = []
    if length <= cap:
        cands.append(length)
    for c in (512, 256, 128, 64, 32, 16, 8):
        if c <= cap and c < length and length % c == 0 and c not in cands:
            cands.append(c)
    if not cands:
        cands.append(length)  # odd length: full-extent block only
    return cands


def _attn_vmem_bytes(block_q, length, head_dim, in_bytes, out_bytes):
    """Double-buffered input/output tiles + f32 softmax temporaries, (8,128)-padded."""
    bq = _round_up(block_q, 8)
    lq = _round_up(length, 8)
    lw = _round_up(length, 128)
    hd = _round_up(head_dim, 128)
    dbuf = 2 * (bq * hd * in_bytes        # q tile
                + lq * hd * in_bytes      # k tile (per head -> L x head_dim only)
                + bq * lw * in_bytes      # bias tile
                + bq * lw * out_bytes)    # prob tile
    temps = 3 * bq * lw * 4               # f32 s / e / bias-upcast temporaries
    return dbuf + temps


# ---------------------------------------------------------------------------
# Stage 1: fused Q/K projection (one lane-dense N=E matmul for all heads)
# ---------------------------------------------------------------------------
def _qk_proj_kernel(x_ref, wqt_ref, bq_ref, wkt_ref, bk_ref, q_ref, k_ref, *, scaling):
    # x_ref:   (1, block_m, E)   input rows (compute dtype, e.g. bf16)
    # wqt_ref: (E, E)            q-projection, pre-transposed (in, out)
    # bq_ref:  (1, E)            q bias
    # wkt_ref: (E, E)            k-projection, pre-transposed
    # bk_ref:  (1, E)            k bias
    # q_ref:   (1, block_m, E)   scaled projected q (compute dtype)
    # k_ref:   (1, block_m, E)   projected k (compute dtype)
    x = x_ref[0]                                                   # (block_m, E)
    q = jnp.dot(x, wqt_ref[...], preferred_element_type=jnp.float32)
    q = (q + bq_ref[...].astype(jnp.float32)) * scaling
    q_ref[0] = q.astype(q_ref.dtype)
    k = jnp.dot(x, wkt_ref[...], preferred_element_type=jnp.float32)
    k = k + bk_ref[...].astype(jnp.float32)
    k_ref[0] = k.astype(k_ref.dtype)


# ---------------------------------------------------------------------------
# Stage 2: scores + bias + row softmax, gridded over (batch, head, q-tile)
# ---------------------------------------------------------------------------
def _attn_probs_kernel(q_ref, k_ref, bias_ref, out_ref):
    # q_ref:    (1, 1, block_q, hd)   pre-projected, pre-scaled q for this head
    # k_ref:    (1, 1, L, hd)         pre-projected k for this head
    # bias_ref: (1, 1, block_q, L)    additive attention bias tile
    # out_ref:  (1, 1, block_q, L)    attention probabilities (compute dtype)
    q = q_ref[0, 0]                                                # (block_q, hd)
    k = k_ref[0, 0]                                                # (L, hd)
    # Contract on head_dim directly (no explicit k transpose / XLU relayout).
    s = lax.dot_general(q, k,
                        dimension_numbers=(((1,), (1,)), ((), ())),
                        preferred_element_type=jnp.float32)        # (block_q, L)
    s = s + bias_ref[0, 0].astype(jnp.float32)
    # Row softmax in f32; exact normalization (approx reciprocal is NOT enough
    # for rows to sum to 1, and the divide hides under the HBM stream anyway).
    m = jnp.max(s, axis=-1, keepdims=True)
    e = jnp.exp(s - m)
    denom = jnp.sum(e, axis=-1, keepdims=True)
    out_ref[0, 0] = (e / denom).astype(out_ref.dtype)


def multihead_attention(query, attn_bias, wq, bq, wk, bk, num_heads,
                        compute_dtype=jnp.bfloat16):
    """query: (B, L, E); attn_bias: (B, H, L, L); wq/wk in PyTorch (out, in) layout.

    Returns attention probabilities of shape (B, H, L, L) in `compute_dtype`.
    """
    bsz, length, embed_dim = query.shape
    head_dim = embed_dim // num_heads
    assert head_dim * num_heads == embed_dim, "embed_dim must be divisible by num_heads"
    scaling = float(head_dim) ** -0.5

    x = jnp.asarray(query, compute_dtype)
    # nn.Linear computes x @ W.T + b with W of shape (out, in) -> pre-transpose once.
    wqt = jnp.asarray(wq, compute_dtype).T                         # (E, E)
    wkt = jnp.asarray(wk, compute_dtype).T                         # (E, E)
    bq2 = jnp.asarray(bq, compute_dtype).reshape(1, embed_dim)
    bk2 = jnp.asarray(bk, compute_dtype).reshape(1, embed_dim)
    # Bias streamed in compute dtype: halves the O(B*H*L^2) bias read.
    # TODO(synk): keep the bias in f32 if fine-grained relative-position biases
    # need the extra ~3 decimal digits.
    bias_in = jnp.asarray(attn_bias, compute_dtype)

    vmem_cap = _vmem_capacity_bytes()
    in_bytes = jnp.dtype(compute_dtype).itemsize
    out_bytes = jnp.dtype(compute_dtype).itemsize

    # ---- Stage 1: Q/K projection ------------------------------------------
    block_m = _block_candidates(length, 256)[0]
    n_m = length // block_m
    proj_call = pl.pallas_call(
        functools.partial(_qk_proj_kernel, scaling=scaling),
        out_shape=(jax.ShapeDtypeStruct((bsz, length, embed_dim), compute_dtype),
                   jax.ShapeDtypeStruct((bsz, length, embed_dim), compute_dtype)),
        grid_spec=pltpu.PrefetchScalarGridSpec(
            num_scalar_prefetch=0,
            grid=(bsz, n_m),
            in_specs=[
                pl.BlockSpec((1, block_m, embed_dim), lambda b, m: (b, m, 0)),
                pl.BlockSpec((embed_dim, embed_dim), lambda b, m: (0, 0)),
                pl.BlockSpec((1, embed_dim), lambda b, m: (0, 0)),
                pl.BlockSpec((embed_dim, embed_dim), lambda b, m: (0, 0)),
                pl.BlockSpec((1, embed_dim), lambda b, m: (0, 0)),
            ],
            out_specs=[
                pl.BlockSpec((1, block_m, embed_dim), lambda b, m: (b, m, 0)),
                pl.BlockSpec((1, block_m, embed_dim), lambda b, m: (b, m, 0)),
            ],
        ),
        compiler_params=pltpu.CompilerParams(
            dimension_semantics=("parallel", "parallel")),
    )
    q_proj, k_proj = proj_call(x, wqt, bq2, wkt, bk2)

    # Per-head layout (B, H, L, hd): one cheap O(B*L*E) XLA relayout, amortized
    # over all heads / q-tiles; keeps the attention kernel's K block at L x hd.
    q4 = q_proj.reshape(bsz, length, num_heads, head_dim).transpose(0, 2, 1, 3)
    k4 = k_proj.reshape(bsz, length, num_heads, head_dim).transpose(0, 2, 1, 3)

    # ---- Stage 2: attention probabilities ----------------------------------
    budget = int(0.6 * vmem_cap)  # leave headroom for compiler-internal scratch
    cands = _block_candidates(length, 512)
    block_q = cands[-1]
    for c in cands:
        if _attn_vmem_bytes(c, length, head_dim, in_bytes, out_bytes) <= budget:
            block_q = c
            break
    n_q = length // block_q

    est = _attn_vmem_bytes(block_q, length, head_dim, in_bytes, out_bytes)
    cp_kwargs = dict(dimension_semantics=("parallel", "parallel", "parallel"))
    if est > 16 * 2 ** 20:  # only raise the scoped limit when actually needed
        cp_kwargs["vmem_limit_bytes"] = min(
            _round_up(int(est * 1.25), 2 ** 20), int(0.8 * vmem_cap))

    attn_call = pl.pallas_call(
        _attn_probs_kernel,
        out_shape=jax.ShapeDtypeStruct(
            (bsz, num_heads, length, length), compute_dtype),
        grid_spec=pltpu.PrefetchScalarGridSpec(
            num_scalar_prefetch=0,
            grid=(bsz, num_heads, n_q),
            in_specs=[
                pl.BlockSpec((1, 1, block_q, head_dim),
                             lambda b, h, qi: (b, h, qi, 0)),
                pl.BlockSpec((1, 1, length, head_dim),
                             lambda b, h, qi: (b, h, 0, 0)),
                pl.BlockSpec((1, 1, block_q, length),
                             lambda b, h, qi: (b, h, qi, 0)),
            ],
            out_specs=pl.BlockSpec((1, 1, block_q, length),
                                   lambda b, h, qi: (b, h, qi, 0)),
        ),
        compiler_params=pltpu.CompilerParams(**cp_kwargs),
    )
    return attn_call(q4, k4, bias_in)


def _reference(query, attn_bias, wq, bq, wk, bk, num_heads):
    """Pure-JAX f32 reference mirroring the PyTorch forward."""
    bsz, length, embed_dim = query.shape
    head_dim = embed_dim // num_heads
    scaling = head_dim ** (-0.5)
    q = query @ wq.T + bq
    k = query @ wk.T + bk
    q = q * scaling
    q = q.reshape(bsz, length, num_heads, head_dim).transpose(0, 2, 1, 3)
    k = k.reshape(bsz, length, num_heads, head_dim).transpose(0, 2, 1, 3)
    attn_weights = jnp.einsum('bhld,bhmd->bhlm', q, k) + attn_bias
    return jax.nn.softmax(attn_weights, axis=-1)


if __name__ == "__main__":
    # Small shapes consistent with the module.
    bsz, length, embed_dim, num_heads = 2, 8, 32, 4

    key = jax.random.PRNGKey(0)
    k1, k2, k3, k4, k5, k6 = jax.random.split(key, 6)
    query = jax.random.normal(k1, (bsz, length, embed_dim), dtype=jnp.float32)
    attn_bias = jax.random.normal(
        k2, (bsz, num_heads, length, length), dtype=jnp.float32)
    # PyTorch Linear layout: (out_features, in_features).
    wq = jax.random.normal(k3, (embed_dim, embed_dim), dtype=jnp.float32) * 0.05
    bq = jax.random.normal(k4, (embed_dim,), dtype=jnp.float32) * 0.05
    wk = jax.random.normal(k5, (embed_dim, embed_dim), dtype=jnp.float32) * 0.05
    bk = jax.random.normal(k6, (embed_dim,), dtype=jnp.float32) * 0.05

    out = multihead_attention(query, attn_bias, wq, bq, wk, bk, num_heads)
    out = jax.block_until_ready(out)

    ref = _reference(query, attn_bias, wq, bq, wk, bk, num_heads)
    assert out.shape == (bsz, num_heads, length, length)

    out_f32 = jnp.asarray(out, jnp.float32)
    # bf16 compute / bf16 output with f32 accumulation -> loosened tolerance.
    assert jnp.allclose(out_f32, ref, atol=2e-2, rtol=2e-2), "mismatch vs reference"
    # Rows are normalized exactly in f32 inside the kernel; the residual error is
    # only the bf16 output quantization (< ~4e-3 worst case).
    row_sums = jnp.sum(out_f32, axis=-1)
    assert jnp.allclose(row_sums, jnp.ones_like(row_sums), atol=1e-2), "rows not normalized"
    print("KERNEL_OK")
</pallas_src>

<mosaic_0001>
module attributes {stable_mosaic.version = 11 : i64} {
  func.func @_qk_proj_kernel(%arg0: i32, %arg1: i32, %arg2: memref<1x8x32xbf16, #tpu.memory_space<vmem>>, %arg3: memref<32x32xbf16, #tpu.memory_space<vmem>>, %arg4: memref<1x32xbf16, #tpu.memory_space<vmem>>, %arg5: memref<32x32xbf16, #tpu.memory_space<vmem>>, %arg6: memref<1x32xbf16, #tpu.memory_space<vmem>>, %arg7: memref<1x8x32xbf16, #tpu.memory_space<vmem>>, %arg8: memref<1x8x32xbf16, #tpu.memory_space<vmem>>) attributes {dimension_semantics = [#tpu.dimension_semantics<parallel>, #tpu.dimension_semantics<parallel>], iteration_bounds = array<i64: 2, 1>, scalar_prefetch = 0 : i64, scratch_operands = 0 : i64, tpu.core_type = #tpu.core_type<tc>, window_params = [{transform_indices = @transform_0, window_bounds = array<i64: 1, 8, 32>}, {pipeline_mode = #tpu.pipeline_mode<synchronous>, transform_indices = @transform_1, window_bounds = array<i64: 32, 32>}, {pipeline_mode = #tpu.pipeline_mode<synchronous>, transform_indices = @transform_2, window_bounds = array<i64: 1, 32>}, {pipeline_mode = #tpu.pipeline_mode<synchronous>, transform_indices = @transform_3, window_bounds = array<i64: 32, 32>}, {pipeline_mode = #tpu.pipeline_mode<synchronous>, transform_indices = @transform_4, window_bounds = array<i64: 1, 32>}, {transform_indices = @transform_5, window_bounds = array<i64: 1, 8, 32>}, {transform_indices = @transform_6, window_bounds = array<i64: 1, 8, 32>}]} {
    %c0 = arith.constant 0 : index
    %c0_0 = arith.constant 0 : index
    %c0_1 = arith.constant 0 : index
    %0 = vector.load %arg2[%c0, %c0_0, %c0_1] : memref<1x8x32xbf16, #tpu.memory_space<vmem>>, vector<1x8x32xbf16>
    %1 = vector.shape_cast %0 : vector<1x8x32xbf16> to vector<8x32xbf16>
    %c0_2 = arith.constant 0 : index
    %c0_3 = arith.constant 0 : index
    %2 = vector.load %arg3[%c0_2, %c0_3] : memref<32x32xbf16, #tpu.memory_space<vmem>>, vector<32x32xbf16>
    %cst = arith.constant dense<0.000000e+00> : vector<8x32xf32>
    %3 = tpu.matmul %1, %2, %cst {dimension_numbers = #tpu.dot_dimension_numbers<[1], [0], [0], [1], [0, 0, 1, 1], [], []>} : vector<8x32xbf16>, vector<32x32xbf16>, vector<8x32xf32> -> vector<8x32xf32>
    %c0_4 = arith.constant 0 : index
    %c0_5 = arith.constant 0 : index
    %4 = vector.load %arg4[%c0_4, %c0_5] : memref<1x32xbf16, #tpu.memory_space<vmem>>, vector<1x32xbf16>
    %5 = arith.extf %4 : vector<1x32xbf16> to vector<1x32xf32>
    %6 = vector.broadcast %5 : vector<1x32xf32> to vector<8x32xf32>
    %7 = arith.addf %3, %6 : vector<8x32xf32>
    %cst_6 = arith.constant 0.353553385 : f32
    %8 = vector.broadcast %cst_6 : f32 to vector<8x32xf32>
    %9 = arith.mulf %7, %8 : vector<8x32xf32>
    %10 = arith.truncf %9 : vector<8x32xf32> to vector<8x32xbf16>
    %c0_7 = arith.constant 0 : index
    %c0_8 = arith.constant 0 : index
    %c0_9 = arith.constant 0 : index
    %11 = vector.load %arg7[%c0_7, %c0_8, %c0_9] : memref<1x8x32xbf16, #tpu.memory_space<vmem>>, vector<1x8x32xbf16>
    %12 = vector.shape_cast %11 : vector<1x8x32xbf16> to vector<8x32xbf16>
    %13 = vector.shape_cast %10 : vector<8x32xbf16> to vector<1x8x32xbf16>
    tpu.vector_store %arg7[%c0_7, %c0_8, %c0_9], %13 {strides = array<i32>} : memref<1x8x32xbf16, #tpu.memory_space<vmem>>, vector<1x8x32xbf16>,
    %c0_10 = arith.constant 0 : index
    %c0_11 = arith.constant 0 : index
    %14 = vector.load %arg5[%c0_10, %c0_11] : memref<32x32xbf16, #tpu.memory_space<vmem>>, vector<32x32xbf16>
    %cst_12 = arith.constant dense<0.000000e+00> : vector<8x32xf32>
    %15 = tpu.matmul %1, %14, %cst_12 {dimension_numbers = #tpu.dot_dimension_numbers<[1], [0], [0], [1], [0, 0, 1, 1], [], []>} : vector<8x32xbf16>, vector<32x32xbf16>, vector<8x32xf32> -> vector<8x32xf32>
    %c0_13 = arith.constant 0 : index
    %c0_14 = arith.constant 0 : index
    %16 = vector.load %arg6[%c0_13, %c0_14] : memref<1x32xbf16, #tpu.memory_space<vmem>>, vector<1x32xbf16>
    %17 = arith.extf %16 : vector<1x32xbf16> to vector<1x32xf32>
    %18 = vector.broadcast %17 : vector<1x32xf32> to vector<8x32xf32>
    %19 = arith.addf %15, %18 : vector<8x32xf32>
    %20 = arith.truncf %19 : vector<8x32xf32> to vector<8x32xbf16>
    %c0_15 = arith.constant 0 : index
    %c0_16 = arith.constant 0 : index
    %c0_17 = arith.constant 0 : index
    %21 = vector.load %arg8[%c0_15, %c0_16, %c0_17] : memref<1x8x32xbf16, #tpu.memory_space<vmem>>, vector<1x8x32xbf16>
    %22 = vector.shape_cast %21 : vector<1x8x32xbf16> to vector<8x32xbf16>
    %23 = vector.shape_cast %20 : vector<8x32xbf16> to vector<1x8x32xbf16>
    tpu.vector_store %arg8[%c0_15, %c0_16, %c0_17], %23 {strides = array<i32>} : memref<1x8x32xbf16, #tpu.memory_space<vmem>>, vector<1x8x32xbf16>,
    return
  }
  func.func @transform_0(%arg0: i32, %arg1: i32) -> (i32, i32, i32) {
    %c0_i32 = arith.constant 0 : i32
    %c0_i32_0 = arith.constant 0 : i32
    return %arg0, %arg1, %c0_i32 : i32, i32, i32
  }
  func.func @transform_1(%arg0: i32, %arg1: i32) -> (i32, i32) {
    %c0_i32 = arith.constant 0 : i32
    %c0_i32_0 = arith.constant 0 : i32
    %c0_i32_1 = arith.constant 0 : i32
    return %c0_i32, %c0_i32_0 : i32, i32
  }
  func.func @transform_2(%arg0: i32, %arg1: i32) -> (i32, i32) {
    %c0_i32 = arith.constant 0 : i32
    %c0_i32_0 = arith.constant 0 : i32
    %c0_i32_1 = arith.constant 0 : i32
    return %c0_i32, %c0_i32_0 : i32, i32
  }
  func.func @transform_3(%arg0: i32, %arg1: i32) -> (i32, i32) {
    %c0_i32 = arith.constant 0 : i32
    %c0_i32_0 = arith.constant 0 : i32
    %c0_i32_1 = arith.constant 0 : i32
    return %c0_i32, %c0_i32_0 : i32, i32
  }
  func.func @transform_4(%arg0: i32, %arg1: i32) -> (i32, i32) {
    %c0_i32 = arith.constant 0 : i32
    %c0_i32_0 = arith.constant 0 : i32
    %c0_i32_1 = arith.constant 0 : i32
    return %c0_i32, %c0_i32_0 : i32, i32
  }
  func.func @transform_5(%arg0: i32, %arg1: i32) -> (i32, i32, i32) {
    %c0_i32 = arith.constant 0 : i32
    %c0_i32_0 = arith.constant 0 : i32
    return %arg0, %arg1, %c0_i32 : i32, i32, i32
  }
  func.func @transform_6(%arg0: i32, %arg1: i32) -> (i32, i32, i32) {
    %c0_i32 = arith.constant 0 : i32
    %c0_i32_0 = arith.constant 0 : i32
    return %arg0, %arg1, %c0_i32 : i32, i32, i32
  }
}

</mosaic_0001>

<bundles_post_ra>
// kernel: tpu_custom_call.1
= control target key start
LH: loop header
LB: loop body
LE: loop exit
PB: predicated region body
PF: predicated region fallthrough
CT: control target
= control target key end

     0   :  { %12 = vsyncpa [#allocation3], 0  ;;  %s1312_s0 = inlined_call_operand.hbm [shape: bf16[2,8,32], index: 0, kind: input, shape index: {}]   ;;  %s1313_s1 = inlined_call_operand.hbm [shape: bf16[32,32], index: 1, kind: input, shape index: {}]   ;;  %s1314_s2 = inlined_call_operand.vmem [shape: bf16[1,32], index: 2, kind: input, shape index: {}]   ;;  %s1315_s3 = inlined_call_operand.hbm [shape: bf16[32,32], index: 3, kind: input, shape index: {}]   ;;  %s1316_s4 = inlined_call_operand.vmem [shape: bf16[1,32], index: 4, kind: input, shape index: {}]   ;;  %s1317_s5 = inlined_call_operand.hbm [shape: bf16[2,8,32], index: 5, kind: output, shape index: {0}]   ;;  %s1318_s6 = inlined_call_operand.hbm [shape: bf16[2,8,32], index: 6, kind: output, shape index: {1}]  }
   0x1   :  { %14 = vsyncpa [#allocation3 + $0x1], 0 }
   0x2   :  { %15 = vsyncpa [#allocation6], 0 }
   0x3   :  { %16 = vsyncpa [#allocation4], 0 }
   0x4   :  { %18 = vsyncpa [#allocation4 + $0x1], 0 }
   0x5   :  { %19 = vsyncpa [#allocation10], 0 }
   0x6   :  { %21 = vsyncpa [#allocation10 + $0x1], 0  ;;  %s1022_s21 = smov 0   ;;  %s1024_s22 = smov 0  }
   0x7   :  { %s1026_s23 = smov 0   ;;  %s1028_s24 = smov 0  }
   0x8   :  { %s1030_s25 = smov 0   ;;  %s1032_s26 = smov 0  }
   0x9 LB: > { %s628_s27 = sadd.s32 4294967295, %s976_s26   ;;  %s629_s28 = sadd.s32 4294967294, %s976_s26   ;;  %s976_s26 = sphi %s1032_s26, %s27_s26   ;;  %s972_s25 = sphi %s1030_s25, %s1343_s25   ;;  %s968_s24 = sphi %s1028_s24, %s1342_s24   ;;  %s964_s23 = sphi %s1026_s23, %s1341_s23   ;;  %s960_s22 = sphi %s1024_s22, %s1340_s22   ;;  %s956_s21 = sphi %s1022_s21, %s1339_s21  }
   0xa   : > { %p61_p0 = scmp.ne.s32.totalorder %s960_s22, %s956_s21  ;;  %p1056_p1 = scmp.eq.s32.totalorder %s628_s27, 0 }
   0xb   : > { %p1060_p2 = scmp.eq.s32.totalorder %s628_s27, 1  ;;  %p177_p3 = scmp.eq.s32.totalorder %s629_s28, 1 }
   0xc   : > { %s1324_s29 = scalar_select %p1056_p1, 1, 0 }
   0xd   : > { %p1066_p4 = por %p1056_p1, %p61_p0  ;;  %p630_p5 = scmp.ge.s32.totalorder %s976_s26, 1 }
   0xe   : > { %p1071_p6 = por %p177_p3, %p61_p0  ;;  %p212_p7 = scmp.lt.s32.totalorder %s976_s26, 3 }
   0xf   : > { %s1326_s7 = scalar_select %p1066_p4, 1, 0 }
  0x10   : > { %s1327_s8 = scalar_select %p1071_p6, 1, 0 }
  0x11   : > { %p1076_p8 = pnand %p630_p5, %p212_p7  ;;  %s978_s10 = smov [#allocation5]  }
  0x12   : > { %1328 = sst [smem:[#allocation15_spill]] %s1327_s8  ;;  %s224_s11 = sshll.u32 %s978_s10, 4  ;;  %s1080_s11 = int_to_ptr.vmem [resolvable:$true] %s224_s11 }
  0x13   : > { %p690_p9 = pneg %p1076_p8  ;;  %s979_s13 = smov [#allocation7]  }
  0x14   : > { %s240_s14 = sshll.u32 %s979_s13, 4  ;;  %s772_s17 = scalar_lea.hbm %s1313_s1, 256  ;;  %s1091_s14 = int_to_ptr.vmem [resolvable:$true] %s240_s14 }
  0x15   : > { %p1087_p11 = pnand %p690_p9, %p1056_p1  ;;  %p773_p12 = scmp.ne.s32.totalorder %s1313_s1, %s772_s17 }
  0x16   : > { %p779_p5 = scmp.lt.u32.totalorder %s772_s17, %s1313_s1 }
  0x17   : > { %p774_p13 = pneg %p1087_p11 }
  0x19   : > { %p775_p0 = pnand %p774_p13, %p773_p12 }
  0x1b   : > { %p776_p3 = pneg %p775_p0 }
  0x1d   : > { %p781_p7 = pnand %p779_p5, %p776_p3 }
  0x1f   : > { %784 = shalt.err (!%p781_p7)
}
  0x20   : > { %s785_s28 = scalar_lea.vmem %s1080_s11, 256  ;;  %p793_p1 = scmp.lt.s32.totalorder %s1080_s11, %s1080_s11 }
  0x21   : > { %p786_p9 = scmp.ne.s32.totalorder %s1080_s11, %s785_s28  ;;  %p794_p12 = scmp.lt.s32.totalorder %s785_s28, %s785_s28 }
  0x23   : > { %p788_p10 = pnand %p786_p9, %p774_p13  ;;  %p795_p0 = por %p794_p12, %p793_p1 }
  0x25   : > { %p789_p6 = pneg %p788_p10 }
  0x27   : > { %p796_p4 = pnand %p795_p0, %p789_p6 }
  0x29   : > { %799 = shalt.err (!%p796_p4)
}
  0x2a   : > { %s980_s10 = smov 64   ;;  %s981_s13 = smov 4  }
  0x2b   : > { %693 = dma.hbm_to_vmem [thread:$0]  (!%p1087_p11), %s1313_s1, 256, %s1080_s11, [#allocation6], %s980_s10, %s980_s10, %s981_s13  }
  0x2c   : > { %s800_s19 = scalar_lea.hbm %s1315_s3, 256 }
  0x2d   : > { %p801_p1 = scmp.ne.s32.totalorder %s1315_s3, %s800_s19  ;;  %p807_p10 = scmp.lt.u32.totalorder %s800_s19, %s1315_s3 }
  0x2f   : > { %p803_p4 = pnand %p801_p1, %p774_p13 }
  0x31   : > { %p804_p6 = pneg %p803_p4 }
  0x33   : > { %p809_p3 = pnand %p807_p10, %p804_p6 }
  0x35   : > { %812 = shalt.err (!%p809_p3)
}
  0x36   : > { %s813_s11 = scalar_lea.vmem %s1091_s14, 256  ;;  %p821_p12 = scmp.lt.s32.totalorder %s1091_s14, %s1091_s14 }
  0x37   : > { %p814_p5 = scmp.ne.s32.totalorder %s1091_s14, %s813_s11  ;;  %p822_p0 = scmp.lt.s32.totalorder %s813_s11, %s813_s11 }
  0x39   : > { %p816_p7 = pnand %p814_p5, %p774_p13  ;;  %p823_p1 = por %p822_p0, %p821_p12 }
  0x3b   : > { %p817_p9 = pneg %p816_p7 }
  0x3d   : > { %p824_p4 = pnand %p823_p1, %p817_p9 }
  0x3f   : > { %827 = shalt.err (!%p824_p4)
}
  0x40   : > { %696 = dma.hbm_to_vmem [thread:$0]  (!%p1087_p11), %s1315_s3, 256, %s1091_s14, [#allocation6], %s980_s10, %s980_s10, %s981_s13  }
  0x41   : > { %s39_s16 = sadd.s32 1, %s972_s25  ;;  %s48_s17 = sadd.s32 1, %s964_s23 }
  0x42   : > { %p41_p13 = scmp.ge.s32.totalorder %s39_s16, 2  ;;  %p55_p6 = scmp.ne.s32.totalorder %s964_s23, %s960_s22 }
  0x43   : > { %p56_p10 = scmp.eq.s32.totalorder %s976_s26, 0  ;;  %p710_p3 = scmp.lt.s32.totalorder %s976_s26, 2 }
  0x44   : > { %s1345_s16 = smov (%p41_p13, %s39_s16), 0  ;;  %p1155_p7 = por %p1060_p2, %p55_p6 }
  0x45   : > { %p57_p5 = por %p56_p10, %p55_p6  ;;  %s43_s18 = ssub.s32 %s972_s25, %s1345_s16 }
  0x46   : > { %s1331_s12 = scalar_select %p1155_p7, 1, 0 }
  0x47   : > { %s257_s19 = sand.u32 1, %s964_s23   ;;  %p46_p9 = scmp.eq.s32.totalorder %s43_s18, 0 }
  0x48   : > { %s634_s14 = sshll.u32 %s257_s19, 2  ;;  %s635_s10 = sshll.u32 %s972_s25, 6 }
  0x49   : > { %s1164_s13 = scalar_select %p46_p9, %s964_s23, %s48_s17  }
  0x4a   : > { %s1169_s28 = scalar_lea.hbm %s1312_s0, %s635_s10  ;;  %s261_s30 = scalar_lea.vmem [#allocation2], %s634_s14 }
  0x4b   : > { %s269_s11 = sshll.u32 %s261_s30, 4  ;;  %p1173_p2 = pnand %p710_p3, %p57_p5  ;;  %s1177_s11 = int_to_ptr.vmem [resolvable:$true] %s269_s11 }
  0x4c   : > { %s258_s15 = scalar_lea.sflag [#allocation3], %s257_s19  ;;  %s828_s17 = scalar_lea.hbm %s1169_s28, 64 }
  0x4d   : > { %p829_p11 = scmp.ne.s32.totalorder %s1169_s28, %s828_s17  ;;  %p830_p12 = pneg %p1173_p2 }
  0x4e   : > { %s833_s10 = scalar_lea.hbm %s1312_s0, 128  ;;  %p834_p4 = scmp.lt.u32.totalorder %s1169_s28, %s1312_s0 }
  0x4f   : > { %p831_p0 = pnand %p830_p12, %p829_p11  ;;  %p835_p13 = scmp.lt.u32.totalorder %s833_s10, %s828_s17 }
  0x50   : > { %p837_p10 = scmp.lt.u32.totalorder %s828_s17, %s1169_s28 }
  0x51   : > { %p832_p1 = pneg %p831_p0  ;;  %p836_p6 = por %p835_p13, %p834_p4 }
  0x53   : > { %p838_p3 = por %p837_p10, %p836_p6 }
  0x55   : > { %p839_p5 = pnand %p838_p3, %p832_p1 }
  0x57   : > { %842 = shalt.err (!%p839_p5)
}
  0x58   : > { %s843_s19 = scalar_lea.vmem %s1177_s11, 64  ;;  %s982_s30 = smov [#allocation2]  }
  0x59   : > { %p844_p9 = scmp.ne.s32.totalorder %s1177_s11, %s843_s19  ;;  %s848_s18 = sshll.u32 %s982_s30, 4  ;;  %s849_s18 = int_to_ptr.vmem [resolvable:$false] %s848_s18 }
  0x5a   : > { %s850_s14 = scalar_lea.vmem %s849_s18, 128  ;;  %p851_p7 = scmp.lt.s32.totalorder %s1177_s11, %s849_s18 }
  0x5b   : > { %p846_p11 = pnand %p844_p9, %p830_p12  ;;  %p852_p4 = scmp.lt.s32.totalorder %s850_s14, %s843_s19 }
  0x5d   : > { %p847_p0 = pneg %p846_p11  ;;  %p853_p13 = por %p852_p4, %p851_p7 }
  0x5f   : > { %p854_p6 = pnand %p853_p13, %p847_p0 }
  0x61   : > { %857 = shalt.err (!%p854_p6)
}
  0x62   : > { %700 = dma.hbm_to_vmem [thread:$0]  (!%p1173_p2), %s1169_s28, 64, %s1177_s11, %s258_s15  }
  0x63   : > { %278 = sbr.rel (%p1076_p8) target bundleno = 375 (0x177), region = 40  ;;  %s1207_s17 = sand.u32 (!%p1076_p8), 1, %s960_s22  }
  0x64   : > { %s1210_s10 = sshll.u32 (!%p1076_p8), %s1207_s17, 2  ;;  %s281_s20 = scalar_lea.sflag (!%p1076_p8), [#allocation3], %s1207_s17 }
  0x65   : > { %s284_s27 = scalar_lea.vmem (!%p1076_p8), [#allocation2], %s1210_s10  ;;  %p1333_p7 = scmp.ne.s32.totalorder (!%p1076_p8), %s1326_s7, 0 }
  0x6a   : > { %939 = dma.done.wait (%p1333_p7), %s281_s20, 64  }
  0x6b   : > { %941 = vsyncadd (%p1333_p7), %s281_s20, 4294967232  ;;  %p1334_p2 = scmp.ne.s32.totalorder %s1324_s29, 0 }
  0x6d   : > { %943 = dma.done.wait (%p1334_p2), [#allocation6], 512  }
  0x6e   : > { %945 = vsyncadd (%p1334_p2), [#allocation6], 4294966784  ;;  %v983_v0 = vmov 0.0   ;;  %vm984_vm0 = vmmov 0   ;;  %v768_v1 = vld [vmem:[#allocation5] sm:$0xff]   ;;  %v769_v2 = vld [vmem:[#allocation7] sm:$0xff]   ;;  %v334_v6 = vlaneseq }
  0x6f   : > { %660 = vmatprep.subr.bf16.mxu0 %v983_v0  ;;  %668 = vmatprep.subr.bf16.mxu1 %v983_v0  ;;  %v770_v3 = vld [vmem:[#allocation5 + $0x8] sm:$0xff]   ;;  %v771_v4 = vld [vmem:[#allocation7 + $0x8] sm:$0xff]   ;;  %vm350_vm1 = vcmask 261120   ;;  %s650_s11 = sshll.u32 %s968_s24, 6  ;;  %s325_s8 = scalar_lea.vmem [#allocation9], %s1210_s10  ;;  %vm396_vm2 = vcmask 257024  }
  0x70   : > { %664 = vmatprep.mubr.msk.bf16.mxu0 %vm984_vm0, %v983_v0  ;;  %672 = vmatprep.mubr.msk.bf16.mxu1 %vm984_vm0, %v983_v0  ;;  %v327_v5 = vld [vmem:[%s284_s27] sm:$0xf]  ;;  %v335_v7 = vshrl.u32 %v334_v6, 7  ;;  %s496_s15 = sshll.u32 %s325_s8, 4  ;;  %s318_s19 = scalar_lea.vmem [#allocation8], %s1210_s10  ;;  %s1236_s15 = int_to_ptr.vmem [resolvable:$true] %s496_s15 }
  0x71   : > { %661 = vmatpush3.bf16.msra.mxu0 %v768_v1  ;;  %669 = vmatpush3.bf16.msra.mxu1 %v769_v2  ;;  %v332_v8 = vld [vmem:[%s1314_s2] sm:$0x1]  ;;  %s482_s30 = sshll.u32 %s318_s19, 4  ;;  %s1234_s20 = scalar_lea.hbm %s1318_s6, %s650_s11  ;;  %s1243_s30 = int_to_ptr.vmem [resolvable:$true] %s482_s30 }
  0x72   : > { %662 = vmatprep.subr.bf16.mxu0 %v983_v0  ;;  %670 = vmatprep.subr.bf16.mxu1 %v983_v0  ;;  %v402_v9 = vld [vmem:[%s1316_s4] sm:$0x1]  ;;  %v333_v10 = vunpack.c.l.bf16 %v332_v8  ;;  %v336_v11 = vsub.s32 0, %v335_v7  ;;  %s1241_s27 = scalar_lea.hbm %s1317_s5, %s650_s11  ;;  %s468_s29 = scalar_lea.sflag [#allocation10], %s1207_s17 }
  0x73   : > { %v403_v12 = vunpack.c.l.bf16 %v402_v9  ;;  %s858_s7 = scalar_lea.vmem %s1236_s15, 64  ;;  %p1335_p12 = scmp.ne.s32.totalorder %s1331_s12, 0 }
  0x74   : > { %v337_v13 = vrot.slane %v333_v10, %v336_v11  ;;  %p859_p8 = scmp.ne.s32.totalorder %s1236_s15, %s858_s7  ;;  %s985_s9 = smov [#allocation9]  }
  0x75   : > { %663 = vmatpush3.bf16.msra.mxu0 %v770_v3  ;;  %671 = vmatpush3.bf16.msra.mxu1 %v771_v4  ;;  %v407_v14 = vrot.slane %v403_v12, %v336_v11  ;;  %s862_s28 = sshll.u32 %s985_s9, 4  ;;  %s863_s28 = int_to_ptr.vmem [resolvable:$false] %s862_s28 }
  0x76   : > { %p860_p1 = pnand %p859_p8, %p1335_p12  ;;  %s864_s18 = scalar_lea.vmem %s863_s28, 128 }
  0x77   : > { %p865_p3 = scmp.lt.s32.totalorder %s1236_s15, %s863_s28  ;;  %p866_p5 = scmp.lt.s32.totalorder %s864_s18, %s858_s7 }
  0x78   : > { %665 = vmatmul.mubr.msk.bf16.vlgmr.msra.gmra.mrb[0].mxu0 %vm350_vm1, %v327_v5  ;;  %673 = vmatmul.mubr.msk.bf16.vlgmr.msra.gmra.mrb[0].mxu1 %vm350_vm1, %v327_v5  ;;  %p861_p10 = pneg %p860_p1 }
  0x79   : > { %p867_p9 = por %p866_p5, %p865_p3 }
  0x7b   : > { %p868_p11 = pnand %p867_p9, %p861_p10 }
 0x14b   : > { %v388_v15 = vpop.f32.mrb[0].mxu0  ;;  %v454_v17 = vpop.f32.mrb[0].mxu1 }
 0x14c   : > { %v389_v16 = vadd.f32 %v388_v15, %v337_v13  ;;  %v666_v18 = vpop.f32.mrb[1].mxu0  ;;  %v455_v19 = vadd.f32 %v454_v17, %v407_v14  ;;  %v674_v20 = vpop.f32.mrb[1].mxu1 }
 0x14d   : > { %v391_v21 = vpop.f32.mrb[2].mxu0  ;;  %v457_v23 = vpop.f32.mrb[2].mxu1 }
 0x14e   : > { %v394_v22 = vmul.f32 0.35355338, %v389_v16  ;;  %v667_v24 = vpop.f32.mrb[3].mxu0  ;;  %v460_v25 = vpack.c.bf16 %v455_v19, %v455_v19  ;;  %v675_v26 = vpop.f32.mrb[3].mxu1 }
 0x150   : > { %v395_v27 = vpack.c.bf16 %v394_v22, %v394_v22  ;;  %461 = vst.msk [vmem:[%s325_s8] sm:$0xf] %vm396_vm2, %v460_v25 }
 0x152   : > { %397 = vst.msk [vmem:[%s318_s19] sm:$0xf] %vm396_vm2, %v395_v27 }
 0x153   : > { %871 = shalt.err (!%p868_p11)
}
 0x154   : > { %s872_s11 = scalar_lea.hbm %s1234_s20, 64  ;;  %s876_s14 = scalar_lea.hbm %s1318_s6, 128 }
 0x155   : > { %p873_p0 = scmp.ne.s32.totalorder %s1234_s20, %s872_s11  ;;  %p877_p6 = scmp.lt.u32.totalorder %s1234_s20, %s1318_s6 }
 0x156   : > { %p878_p7 = scmp.lt.u32.totalorder %s876_s14, %s872_s11  ;;  %p880_p8 = scmp.lt.u32.totalorder %s872_s11, %s1234_s20 }
 0x157   : > { %p874_p4 = pnand %p873_p0, %p1335_p12 }
 0x158   : > { %p879_p2 = por %p878_p7, %p877_p6 }
 0x159   : > { %p875_p13 = pneg %p874_p4 }
 0x15a   : > { %p881_p1 = por %p880_p8, %p879_p2 }
 0x15c   : > { %p882_p10 = pnand %p881_p1, %p875_p13 }
 0x15e   : > { %885 = shalt.err (!%p882_p10)
}
 0x15f   : > { %687 = dma.vmem_to_hbm [thread:$0]  (%p1335_p12), %s1236_s15, 64, %s1234_s20, %s468_s29  }
 0x160   : > { %s463_s7 = scalar_lea.sflag [#allocation4], %s1207_s17  ;;  %s886_s9 = scalar_lea.vmem %s1243_s30, 64 }
 0x161   : > { %p887_p3 = scmp.ne.s32.totalorder %s1243_s30, %s886_s9  ;;  %s986_s28 = smov [#allocation8]  }
 0x162   : > { %s890_s18 = sshll.u32 %s986_s28, 4  ;;  %s891_s18 = int_to_ptr.vmem [resolvable:$false] %s890_s18 }
 0x163   : > { %p888_p5 = pnand %p887_p3, %p1335_p12  ;;  %s892_s11 = scalar_lea.vmem %s891_s18, 128 }
 0x164   : > { %p893_p11 = scmp.lt.s32.totalorder %s1243_s30, %s891_s18  ;;  %p894_p0 = scmp.lt.s32.totalorder %s892_s11, %s886_s9 }
 0x165   : > { %p889_p9 = pneg %p888_p5 }
 0x166   : > { %p895_p4 = por %p894_p0, %p893_p11 }
 0x168   : > { %p896_p13 = pnand %p895_p4, %p889_p9 }
 0x16a   : > { %899 = shalt.err (!%p896_p13)
}
 0x16b   : > { %s900_s17 = scalar_lea.hbm %s1241_s27, 64  ;;  %s904_s29 = scalar_lea.hbm %s1317_s5, 128 }
 0x16c   : > { %p901_p6 = scmp.ne.s32.totalorder %s1241_s27, %s900_s17  ;;  %p905_p8 = scmp.lt.u32.totalorder %s1241_s27, %s1317_s5 }
 0x16d   : > { %p906_p1 = scmp.lt.u32.totalorder %s904_s29, %s900_s17  ;;  %p908_p3 = scmp.lt.u32.totalorder %s900_s17, %s1241_s27 }
 0x16e   : > { %p902_p7 = pnand %p901_p6, %p1335_p12 }
 0x16f   : > { %p907_p10 = por %p906_p1, %p905_p8 }
 0x170   : > { %p903_p2 = pneg %p902_p7 }
 0x171   : > { %p909_p5 = por %p908_p3, %p907_p10 }
 0x173   : > { %p910_p9 = pnand %p909_p5, %p903_p2 }
 0x175   : > { %913 = shalt.err (!%p910_p9)
}
 0x176   : > { %686 = dma.vmem_to_hbm [thread:$0]  (%p1335_p12), %s1243_s30, 64, %s1241_s27, %s463_s7  }
 0x177 PF: > { %s1336_s14 = sld [smem:[#allocation15_spill]]  ;;  %s508_s24 = sand.u32 1, %s956_s21  }
 0x178   : > { %p1338_p0 = scmp.ge.s32.totalorder %s976_s26, 2  ;;  %s509_s10 = scalar_lea.sflag [#allocation4], %s508_s24 }
 0x17d   : > { %p1337_p11 = scmp.ne.s32.totalorder %s1336_s14, 0 }
 0x17f   : > { %p702_p4 = pnand %p1338_p0, %p1337_p11 }
 0x181   : > { %947 = dma.done.wait (!%p702_p4), %s509_s10, 64  }
 0x182   : > { %949 = vsyncadd (!%p702_p4), %s509_s10, 4294967232  ;;  %s518_s9 = scalar_lea.sflag [#allocation10], %s508_s24 }
 0x183   : > { %951 = dma.done.wait (!%p702_p4), %s518_s9, 64  }
 0x184   : > { %953 = vsyncadd (!%p702_p4), %s518_s9, 4294967232  ;;  %s27_s26 = sadd.s32 1, %s976_s26   ;;  %s1339_s21 = smov %s960_s22 }
 0x185   : > { %p24_p13 = scmp.ge.s32.totalorder %s27_s26, 4   ;;  %s1340_s22 = smov %s964_s23 }
 0x186   : > { %s1341_s23 = smov %s1164_s13  ;;  %s1342_s24 = smov %s972_s25 }
 0x187   : > { %s1343_s25 = smov %s1345_s16  ;;  %26 = sbr.rel (!%p24_p13) target bundleno = 9 (0x9), region = 110 }
 0x18e   :  { %523 = vsyncpa [#allocation3], 1 }
 0x18f   :  { %525 = vsyncpa [#allocation3 + $0x1], 1 }
 0x190   :  { %526 = vsyncpa [#allocation6], 1 }
 0x191   :  { %527 = vsyncpa [#allocation4], 1 }
 0x192   :  { %529 = vsyncpa [#allocation4 + $0x1], 1 }
 0x193   :  { %530 = vsyncpa [#allocation10], 1 }
 0x194   :  { %532 = vsyncpa [#allocation10 + $0x1], 1 }

</bundles_post_ra>
